<compile_context>
chip_gen: v6e
topology: v6e:2x2x1
jax: 0.10.0
libtpu: 0.0.40
codegen_flags: <defaults>
</compile_context>

<pallas_src>
import numpy as np
import jax
import jax.numpy as jnp
from jax.experimental import pallas as pl
from jax.experimental.pallas import tpu as pltpu

_MIB = 1024 * 1024
_SUBLANE_Q = 32  # sublane alignment quantum covering f32(8)/bf16(16)/int8(32)


def _downsample_mm_kernel(x_ref, sel_ref, o_ref):
    # x_ref:   (Rb, G*w)            packed slab: G consecutive input rows per row
    # sel_ref: (G*w, (G/2)*w_out)   one-hot selector (row + column stride-2 fused)
    # o_ref:   (Rb, (G/2)*w_out)
    x = x_ref[...]
    if x.dtype != sel_ref.dtype:          # trace-time check; no-op for f32/bf16
        x = x.astype(sel_ref.dtype)
    out = jnp.dot(x, sel_ref[...], preferred_element_type=jnp.float32)
    o_ref[...] = out.astype(o_ref.dtype)


def _tpu_vmem_capacity_bytes(default=64 * _MIB):
    """Physical VMEM capacity; conservative 64 MiB (v7x-sized) fallback."""
    try:
        info = pltpu.get_tpu_info()
        cap = getattr(info, "vmem_capacity_bytes", None)
        return int(cap) if cap else default
    except Exception:
        return default


def _choose_group_half(total_rows, w_out):
    """# of row-pairs folded into the lane dim.

    Smallest g_half with lane_out = g_half*w_out >= 128 (lane-dense output)
    such that 2*g_half divides total_rows.  Search upward first (bounded,
    since MXU MACs scale linearly with g_half); only fall below the 128-lane
    threshold as a last resort.  total_rows is always even, so g_half=1 is a
    guaranteed fallback.
    """
    max_g_half = max(1, total_rows // 2)
    target = min(max(1, -(-128 // w_out)), max_g_half)   # ceil(128 / w_out)
    for gh in range(target, min(max_g_half, 4 * target) + 1):
        if total_rows % (2 * gh) == 0:
            return gh
    for gh in range(target - 1, 0, -1):                  # last resort: < 128 lanes
        if total_rows % (2 * gh) == 0:
            return gh
    return 1


def _choose_block_rows(p_rows, row_bytes, target_bytes):
    """Packed rows per grid step.

    ~target_bytes input slab, multiple of 32 sublanes, at least 2 grid steps
    when possible (v7x two-TensorCore sharding), and an exact divisor only if
    it is not below rb//2 — otherwise keep a non-divisor rb and let Pallas
    mask the tail block (garbage tail rows map to dropped output rows).
    """
    q = _SUBLANE_Q
    if p_rows <= q:
        return p_rows                                    # single full block
    rb = max(q, min(p_rows, target_bytes // max(row_bytes, 1)))
    rb = (rb // q) * q
    # keep at least 2 grid steps so a "parallel" axis can feed both v7x cores
    half = -(-p_rows // 2)
    rb = max(q, min(rb, ((half + q - 1) // q) * q))
    floor = max(rb // 2, q)
    for cand in range(rb, floor - 1, -q):
        if p_rows % cand == 0:
            return cand
    return rb                                            # masked tail block


@jax.jit
def downsample_stride(x):
    """Equivalent of DownsampleStride().forward(x) for NCHW input."""
    n, c, h, w = x.shape
    h_out = (h + 1) // 2
    w_out = (w + 1) // 2

    # Odd H: append one dummy (never selected) row so packed-row parity is
    # uniform across the flattened (n, c, h) rows.
    # TODO(synk): replace this full-tensor pad (extra HBM round trip when H is
    # odd) with a per-(n,c)-plane blocked variant; odd H is rare in this net.
    if h % 2:
        x = jnp.pad(x, ((0, 0), (0, 0), (0, 1), (0, 0)))
    h_pad = x.shape[2]

    total_rows = n * c * h_pad                           # even
    g_half = _choose_group_half(total_rows, w_out)
    g = 2 * g_half
    p_rows = total_rows // g                             # packed rows
    lane_in = g * w
    lane_out = g_half * w_out

    x2 = x.reshape(p_rows, lane_in)                      # free reshape

    # Selector in the input dtype for f32/bf16 (no activation upcast); other
    # dtypes accumulate through f32 (exact for f16 and |int| < 2^24).
    sel_dtype = x.dtype if x.dtype in (jnp.float32, jnp.bfloat16) else jnp.float32
    gh = np.arange(g_half)
    j = np.arange(w_out)
    row_idx = ((2 * gh)[:, None] * w + 2 * j[None, :]).reshape(-1)
    col_idx = (gh[:, None] * w_out + j[None, :]).reshape(-1)
    sel_np = np.zeros((lane_in, lane_out), dtype=jnp.dtype(sel_dtype))
    sel_np[row_idx, col_idx] = 1                         # compile-time constant

    itemsize = jnp.dtype(x.dtype).itemsize
    sel_itemsize = jnp.dtype(sel_dtype).itemsize
    cast_needed = jnp.dtype(sel_dtype) != jnp.dtype(x.dtype)

    # Generation-aware sizing: big slabs amortize the ~0.35 us/step pipeline
    # overhead (matters most at v7x's 3.2 TB/s); vmem limit stays well under
    # physical VMEM (64 MiB/TC on v7x, 128 MiB on v5e/v6e).  Dtypes that get
    # upcast in-kernel use a smaller slab so the converted copy fits too.
    vmem_cap = _tpu_vmem_capacity_bytes()
    slab_target = (4 if cast_needed else 16) * _MIB
    vmem_limit = max(32 * _MIB, min(64 * _MIB, (3 * vmem_cap) // 4))

    rb = _choose_block_rows(p_rows, lane_in * itemsize, slab_target)
    grid = (pl.cdiv(p_rows, rb),)

    cost = pl.CostEstimate(
        flops=2 * p_rows * lane_in * lane_out,
        transcendentals=0,
        bytes_accessed=(p_rows * lane_in * itemsize
                        + p_rows * lane_out * itemsize
                        + lane_in * lane_out * sel_itemsize),
    )

    out2 = pl.pallas_call(
        _downsample_mm_kernel,
        out_shape=jax.ShapeDtypeStruct((p_rows, lane_out), x.dtype),
        grid=grid,
        in_specs=[
            pl.BlockSpec((rb, lane_in), lambda i: (i, 0)),
            pl.BlockSpec((lane_in, lane_out), lambda i: (0, 0)),
        ],
        out_specs=pl.BlockSpec((rb, lane_out), lambda i: (i, 0)),
        compiler_params=pltpu.CompilerParams(
            dimension_semantics=("parallel",),
            vmem_limit_bytes=vmem_limit,
        ),
        cost_estimate=cost,
    )(x2, sel_np)

    return out2.reshape(n, c, h_out, w_out)


if __name__ == "__main__":
    # NOTE: the module's __init__ arg `n` is unused in its forward (stride is
    # hard-coded to 2), so there are no parameters to initialize.
    key = jax.random.PRNGKey(0)
    k1, k2 = jax.random.split(key)

    # Primary small test shape (batch=2, channels=4, 16x16 spatial).
    x = jax.random.normal(key, (2, 4, 16, 16), dtype=jnp.float32)
    out = jax.block_until_ready(downsample_stride(x))
    ref = x[..., ::2, ::2]
    assert out.shape == ref.shape, (out.shape, ref.shape)
    assert out.dtype == ref.dtype, (out.dtype, ref.dtype)
    assert bool(jnp.array_equal(out, ref)), "f32 16x16 mismatch vs strided slice"

    # Multi-step grid path (two blocks along the packed-row axis), f32.
    xb = jax.random.normal(k1, (4, 16, 32, 32), dtype=jnp.float32)
    outb = jax.block_until_ready(downsample_stride(xb))
    assert bool(jnp.array_equal(outb, xb[..., ::2, ::2])), "f32 multi-block mismatch"

    # Same shape in bf16 (selector stays bf16, f32 accumulation is exact).
    xh = xb.astype(jnp.bfloat16)
    outh = jax.block_until_ready(downsample_stride(xh))
    assert bool(jnp.array_equal(outh, xh[..., ::2, ::2])), "bf16 mismatch"

    # Odd spatial sizes (exercises odd-H pad path and odd W).
    xo = jax.random.normal(k2, (1, 3, 7, 9), dtype=jnp.float32)
    outo = jax.block_until_ready(downsample_stride(xo))
    assert bool(jnp.array_equal(outo, xo[..., ::2, ::2])), "odd-shape mismatch"

    print("KERNEL_OK")
</pallas_src>

<mosaic_0001>
module attributes {stable_mosaic.version = 11 : i64} {
  func.func @_downsample_mm_kernel(%arg0: i32, %arg1: memref<4x512xf32, #tpu.memory_space<vmem>>, %arg2: memref<512x128xf32, #tpu.memory_space<vmem>>, %arg3: memref<4x128xf32, #tpu.memory_space<vmem>>) attributes {dimension_semantics = [#tpu.dimension_semantics<parallel>], iteration_bounds = array<i64: 1>, scalar_prefetch = 0 : i64, scratch_operands = 0 : i64, tpu.core_type = #tpu.core_type<tc>, window_params = [{transform_indices = @transform_0, window_bounds = array<i64: 4, 512>}, {pipeline_mode = #tpu.pipeline_mode<synchronous>, transform_indices = @transform_1, window_bounds = array<i64: 512, 128>}, {transform_indices = @transform_2, window_bounds = array<i64: 4, 128>}]} {
    %c0 = arith.constant 0 : index
    %c0_0 = arith.constant 0 : index
    %0 = vector.load %arg1[%c0, %c0_0] : memref<4x512xf32, #tpu.memory_space<vmem>>, vector<4x512xf32>
    %c0_1 = arith.constant 0 : index
    %c0_2 = arith.constant 0 : index
    %1 = vector.load %arg2[%c0_1, %c0_2] : memref<512x128xf32, #tpu.memory_space<vmem>>, vector<512x128xf32>
    %cst = arith.constant dense<0.000000e+00> : vector<4x128xf32>
    %2 = tpu.matmul %0, %1, %cst {dimension_numbers = #tpu.dot_dimension_numbers<[1], [0], [0], [1], [0, 0, 1, 1], [], []>} : vector<4x512xf32>, vector<512x128xf32>, vector<4x128xf32> -> vector<4x128xf32>
    %c0_3 = arith.constant 0 : index
    %c0_4 = arith.constant 0 : index
    %3 = vector.load %arg3[%c0_3, %c0_4] : memref<4x128xf32, #tpu.memory_space<vmem>>, vector<4x128xf32>
    tpu.vector_store %arg3[%c0_3, %c0_4], %2 {strides = array<i32>} : memref<4x128xf32, #tpu.memory_space<vmem>>, vector<4x128xf32>,
    return
  }
  func.func @transform_0(%arg0: i32) -> (i32, i32) {
    %c0_i32 = arith.constant 0 : i32
    %c0_i32_0 = arith.constant 0 : i32
    return %arg0, %c0_i32 : i32, i32
  }
  func.func @transform_1(%arg0: i32) -> (i32, i32) {
    %c0_i32 = arith.constant 0 : i32
    %c0_i32_0 = arith.constant 0 : i32
    %c0_i32_1 = arith.constant 0 : i32
    return %c0_i32, %c0_i32_0 : i32, i32
  }
  func.func @transform_2(%arg0: i32) -> (i32, i32) {
    %c0_i32 = arith.constant 0 : i32
    %c0_i32_0 = arith.constant 0 : i32
    return %arg0, %c0_i32 : i32, i32
  }
}

</mosaic_0001>

<bundles_post_ra>
// kernel: downsample_stride.1
= control target key start
LH: loop header
LB: loop body
LE: loop exit
PB: predicated region body
PF: predicated region fallthrough
CT: control target
= control target key end

     0   :  { %7 = vsyncpa [#allocation3], 0  ;;  %s340_s9 = smov [#allocation2]   ;;  %s370_s0 = inlined_call_operand.vmem [shape: f32[4,512], index: 0, kind: input, shape index: {}]   ;;  %s371_s1 = inlined_call_operand.hbm [shape: f32[512,128], index: 1, kind: input, shape index: {}]   ;;  %s372_s2 = inlined_call_operand.vmem [shape: f32[4,128], index: 2, kind: output, shape index: {}]  }
   0x1   :  { %s15_s10 = sshll.u32 %s340_s9, 4  ;;  %s16_s10 = int_to_ptr.vmem [resolvable:$true] %s15_s10 }
   0x2   :  { %s326_s11 = scalar_lea.vmem %s16_s10, 8192  ;;  %p331_p1 = scmp.lt.s32.totalorder %s16_s10, %s16_s10 }
   0x3   :  { %p327_p0 = scmp.ne.s32.totalorder %s16_s10, %s326_s11  ;;  %p332_p2 = scmp.lt.s32.totalorder %s326_s11, %s326_s11 }
   0x5   :  { %p333_p3 = por %p332_p2, %p331_p1 }
   0x7   :  { %p334_p4 = pnand %p333_p3, %p327_p0 }
   0x9   :  { %337 = shalt.err (!%p334_p4)
}
   0xa   :  { %s341_s12 = smov 128   ;;  %s342_s13 = smov 8  }
   0xb   :  { %21 = dma.hbm_to_vmem [thread:$0]  %s371_s1, 8192, %s16_s10, [#allocation3], %s341_s12, %s341_s12, %s342_s13  }
   0xc   :  { %338 = dma.done.wait [#allocation3], 8192  }
   0xd   :  { %339 = vsyncadd [#allocation3], 4294959104  ;;  %v58_v0 = vld [vmem:[#allocation2 + $0xf8] sm:$0xff]  ;;  %v57_v4 = vld [vmem:[#allocation2 + $0xf0] sm:$0xff] }
   0xe   :  { %v90_v1 = vld [vmem:[#allocation2 + $0x1f8] sm:$0xff]  ;;  %243 = vmatprep.subr.mxu0 %v58_v0  ;;  %v89_v5 = vld [vmem:[#allocation2 + $0x1f0] sm:$0xff]  ;;  %v56_v8 = vld [vmem:[#allocation2 + $0xe8] sm:$0xff] }
   0xf   :  { %v42_v2 = vld [vmem:[#allocation2 + $0x78] sm:$0xff]  ;;  %278 = vmatprep.subr.mxu1 %v90_v1  ;;  %v41_v6 = vld [vmem:[#allocation2 + $0x70] sm:$0xff]  ;;  %v88_v9 = vld [vmem:[#allocation2 + $0x1e8] sm:$0xff] }
  0x10   :  { %v74_v3 = vld [vmem:[#allocation2 + $0x178] sm:$0xff]  ;;  %244 = vmatpush3.msra.mxu0 %v42_v2  ;;  %v73_v7 = vld [vmem:[#allocation2 + $0x170] sm:$0xff]  ;;  %v40_v10 = vld [vmem:[#allocation2 + $0x68] sm:$0xff] }
  0x11   :  { %279 = vmatpush3.msra.mxu1 %v74_v3  ;;  %245 = vmatprep.subr.mxu0 %v57_v4  ;;  %v72_v11 = vld [vmem:[#allocation2 + $0x168] sm:$0xff]  ;;  %v55_v12 = vld [vmem:[#allocation2 + $0xe0] sm:$0xff]  ;;  %v54_v16 = vld [vmem:[#allocation2 + $0xd8] sm:$0xff] }
  0x12   :  { %280 = vmatprep.subr.mxu1 %v89_v5  ;;  %246 = vmatpush3.msra.mxu0 %v41_v6  ;;  %v87_v13 = vld [vmem:[#allocation2 + $0x1e0] sm:$0xff]  ;;  %v86_v17 = vld [vmem:[#allocation2 + $0x1d8] sm:$0xff]  ;;  %v53_v20 = vld [vmem:[#allocation2 + $0xd0] sm:$0xff] }
  0x13   :  { %281 = vmatpush3.msra.mxu1 %v73_v7  ;;  %247 = vmatprep.subr.mxu0 %v56_v8  ;;  %v39_v14 = vld [vmem:[#allocation2 + $0x60] sm:$0xff]  ;;  %v38_v18 = vld [vmem:[#allocation2 + $0x58] sm:$0xff]  ;;  %v85_v21 = vld [vmem:[#allocation2 + $0x1d0] sm:$0xff] }
  0x14   :  { %282 = vmatprep.subr.mxu1 %v88_v9  ;;  %v71_v15 = vld [vmem:[#allocation2 + $0x160] sm:$0xff]  ;;  %248 = vmatpush3.msra.mxu0 %v40_v10  ;;  %v70_v19 = vld [vmem:[#allocation2 + $0x158] sm:$0xff]  ;;  %v37_v22 = vld [vmem:[#allocation2 + $0x50] sm:$0xff] }
  0x15   :  { %283 = vmatpush3.msra.mxu1 %v72_v11  ;;  %249 = vmatprep.subr.mxu0 %v55_v12  ;;  %v69_v23 = vld [vmem:[#allocation2 + $0x150] sm:$0xff]  ;;  %v52_v24 = vld [vmem:[#allocation2 + $0xc8] sm:$0xff]  ;;  %v51_v28 = vld [vmem:[#allocation2 + $0xc0] sm:$0xff] }
  0x16   :  { %284 = vmatprep.subr.mxu1 %v87_v13  ;;  %250 = vmatpush3.msra.mxu0 %v39_v14  ;;  %v84_v25 = vld [vmem:[#allocation2 + $0x1c8] sm:$0xff]  ;;  %v83_v29 = vld [vmem:[#allocation2 + $0x1c0] sm:$0xff]  ;;  %v50_v32 = vld [vmem:[#allocation2 + $0xb8] sm:$0xff] }
  0x17   :  { %285 = vmatpush3.msra.mxu1 %v71_v15  ;;  %251 = vmatprep.subr.mxu0 %v54_v16  ;;  %v36_v26 = vld [vmem:[#allocation2 + $0x48] sm:$0xff]  ;;  %v35_v30 = vld [vmem:[#allocation2 + $0x40] sm:$0xff]  ;;  %v82_v33 = vld [vmem:[#allocation2 + $0x1b8] sm:$0xff] }
  0x18   :  { %286 = vmatprep.subr.mxu1 %v86_v17  ;;  %252 = vmatpush3.msra.mxu0 %v38_v18  ;;  %v68_v27 = vld [vmem:[#allocation2 + $0x148] sm:$0xff]  ;;  %v67_v31 = vld [vmem:[#allocation2 + $0x140] sm:$0xff]  ;;  %v34_v34 = vld [vmem:[#allocation2 + $0x38] sm:$0xff] }
  0x19   :  { %287 = vmatpush3.msra.mxu1 %v70_v19  ;;  %253 = vmatprep.subr.mxu0 %v53_v20  ;;  %v66_v35 = vld [vmem:[#allocation2 + $0x138] sm:$0xff]  ;;  %v49_v36 = vld [vmem:[#allocation2 + $0xb0] sm:$0xff]  ;;  %v48_v40 = vld [vmem:[#allocation2 + $0xa8] sm:$0xff] }
  0x1a   :  { %288 = vmatprep.subr.mxu1 %v85_v21  ;;  %254 = vmatpush3.msra.mxu0 %v37_v22  ;;  %v81_v37 = vld [vmem:[#allocation2 + $0x1b0] sm:$0xff]  ;;  %v80_v41 = vld [vmem:[#allocation2 + $0x1a8] sm:$0xff]  ;;  %v47_v44 = vld [vmem:[#allocation2 + $0xa0] sm:$0xff] }
  0x1b   :  { %289 = vmatpush3.msra.mxu1 %v69_v23  ;;  %255 = vmatprep.subr.mxu0 %v52_v24  ;;  %v33_v38 = vld [vmem:[#allocation2 + $0x30] sm:$0xff]  ;;  %v32_v42 = vld [vmem:[#allocation2 + $0x28] sm:$0xff]  ;;  %v79_v45 = vld [vmem:[#allocation2 + $0x1a0] sm:$0xff] }
  0x1c   :  { %290 = vmatprep.subr.mxu1 %v84_v25  ;;  %256 = vmatpush3.msra.mxu0 %v36_v26  ;;  %v65_v39 = vld [vmem:[#allocation2 + $0x130] sm:$0xff]  ;;  %v64_v43 = vld [vmem:[#allocation2 + $0x128] sm:$0xff]  ;;  %v31_v46 = vld [vmem:[#allocation2 + $0x20] sm:$0xff] }
  0x1d   :  { %291 = vmatpush3.msra.mxu1 %v68_v27  ;;  %257 = vmatprep.subr.mxu0 %v51_v28  ;;  %v63_v47 = vld [vmem:[#allocation2 + $0x120] sm:$0xff]  ;;  %v46_v48 = vld [vmem:[#allocation2 + $0x98] sm:$0xff]  ;;  %v45_v52 = vld [vmem:[#allocation2 + $0x90] sm:$0xff] }
  0x1e   :  { %292 = vmatprep.subr.mxu1 %v83_v29  ;;  %258 = vmatpush3.msra.mxu0 %v35_v30  ;;  %v78_v49 = vld [vmem:[#allocation2 + $0x198] sm:$0xff]  ;;  %v77_v53 = vld [vmem:[#allocation2 + $0x190] sm:$0xff]  ;;  %v25_v56 = vld [vmem:[%s370_s0] sm:$0xff] }
  0x1f   :  { %293 = vmatpush3.msra.mxu1 %v67_v31  ;;  %259 = vmatprep.subr.mxu0 %v50_v32  ;;  %v30_v50 = vld [vmem:[#allocation2 + $0x18] sm:$0xff]  ;;  %v29_v54 = vld [vmem:[#allocation2 + $0x10] sm:$0xff]  ;;  %v44_v57 = vld [vmem:[#allocation2 + $0x88] sm:$0xff]  ;;  %v93_v0 = vcombine.high %v25_v56, %v25_v56 }
  0x20   :  { %294 = vmatprep.subr.mxu1 %v82_v33  ;;  %260 = vmatpush3.msra.mxu0 %v34_v34  ;;  %v62_v51 = vld [vmem:[#allocation2 + $0x118] sm:$0xff]  ;;  %v61_v55 = vld [vmem:[#allocation2 + $0x110] sm:$0xff]  ;;  %v76_v58 = vld [vmem:[#allocation2 + $0x188] sm:$0xff] }
  0x21   :  { %295 = vmatpush3.msra.mxu1 %v66_v35  ;;  %261 = vmatprep.subr.mxu0 %v49_v36  ;;  %v26_v59 = vld [vmem:[%s370_s0 + $0x8] sm:$0xff]  ;;  %v43_v62 = vld [vmem:[#allocation2 + $0x80] sm:$0xff] }
  0x22   :  { %296 = vmatprep.subr.mxu1 %v81_v37  ;;  %262 = vmatpush3.msra.mxu0 %v33_v38  ;;  %v28_v60 = vld [vmem:[#allocation2 + $0x8] sm:$0xff]  ;;  %v75_v63 = vld [vmem:[#allocation2 + $0x180] sm:$0xff]  ;;  %v94_v2 = vcombine.high %v26_v59, %v26_v59 }
  0x23   :  { %297 = vmatpush3.msra.mxu1 %v65_v39  ;;  %263 = vmatprep.subr.mxu0 %v48_v40  ;;  %v60_v61 = vld [vmem:[#allocation2 + $0x108] sm:$0xff]  ;;  %v27_v1 = vld [vmem:[#allocation2] sm:$0xff] }
  0x24   :  { %298 = vmatprep.subr.mxu1 %v80_v41  ;;  %264 = vmatpush3.msra.mxu0 %v32_v42  ;;  %v59_v3 = vld [vmem:[#allocation2 + $0x100] sm:$0xff] }
  0x25   :  { %299 = vmatpush3.msra.mxu1 %v64_v43  ;;  %265 = vmatprep.subr.mxu0 %v47_v44 }
  0x26   :  { %300 = vmatprep.subr.mxu1 %v79_v45  ;;  %266 = vmatpush3.msra.mxu0 %v31_v46 }
  0x27   :  { %301 = vmatpush3.msra.mxu1 %v63_v47  ;;  %267 = vmatprep.subr.mxu0 %v46_v48 }
  0x28   :  { %302 = vmatprep.subr.mxu1 %v78_v49  ;;  %268 = vmatpush3.msra.mxu0 %v30_v50 }
  0x29   :  { %303 = vmatpush3.msra.mxu1 %v62_v51  ;;  %269 = vmatprep.subr.mxu0 %v45_v52 }
  0x2a   :  { %304 = vmatprep.subr.mxu1 %v77_v53  ;;  %270 = vmatpush3.msra.mxu0 %v29_v54 }
  0x2b   :  { %305 = vmatpush3.msra.mxu1 %v61_v55  ;;  %271 = vmatprep.subr.mxu0 %v44_v57 }
  0x2c   :  { %306 = vmatprep.subr.mxu1 %v76_v58  ;;  %272 = vmatpush3.msra.mxu0 %v28_v60 }
  0x2d   :  { %307 = vmatpush3.msra.mxu1 %v60_v61  ;;  %273 = vmatprep.subr.mxu0 %v43_v62 }
  0x2e   :  { %308 = vmatprep.subr.mxu1 %v75_v63  ;;  %274 = vmatpush3.msra.mxu0 %v27_v1 }
  0x2f   :  { %161 = vmatprep.mubr.f32.mxu0 %v93_v0  ;;  %309 = vmatpush3.msra.mxu1 %v59_v3 }
  0x30   :  { %231 = vmatprep.mubr.f32.mxu1 %v94_v2  ;;  %162 = vmatmul.mubr.f32.vlgmr.msra.gmra.mxu0 %v25_v56 }
  0x31   :  { %232 = vmatmul.mubr.f32.vlgmr.msra.gmra.mxu1 %v26_v59 }
  0xf0   :  { %v275_v4 = vpop.f32.mrf.mxu0 }
  0xf1   :  { %v310_v5 = vpop.f32.mrf.mxu1 }
  0xf2   :  { %v276_v6 = vpop.f32.mrf.mxu0 }
  0xf3   :  { %v311_v7 = vpop.f32.mrf.mxu1  ;;  %v277_v8 = vadd.f32 %v276_v6, %v275_v4 }
  0xf4   :  { %v312_v9 = vadd.f32 %v311_v7, %v310_v5 }
  0xf6   :  { %v234_v10 = vadd.f32 %v312_v9, %v277_v8 }
  0xf8   :  { %237 = vst [vmem:[%s372_s2] sm:$0xf] %v234_v10 }
  0xf9   :  { %242 = vsyncpa [#allocation3], 1 }

</bundles_post_ra>
